<compile_context>
chip_gen: v5e
topology: v5e:2x2
jax: 0.10.0
libtpu: 0.0.40
codegen_flags: <defaults>
</compile_context>

<pallas_src>
import jax
import jax.numpy as jnp
from jax import lax
from jax.experimental import pallas as pl
from jax.experimental.pallas import tpu as pltpu


# ---------------------------------------------------------------------------
# Fused kernel.  Per (feature-tile j, batch-tile i):
#   (once per j)  hid = tanh(w1_pack @ fe_pack_tile)        # (Wh, tn)
#                 Mt  = w2ᵀ @ hid + b2                      # (H, tn) -> VMEM scratch
#   (every i)     out = hidden_rep_tile @ Mt + bias_row     # (tm, tn)
# ---------------------------------------------------------------------------
def _decoder_fused_kernel(h_ref, fe_ref, w1_ref, w2_ref, o_ref, mt_ref):
    wh = w2_ref.shape[1] - 1  # wpn hidden width (last column of w2_ref is b2)

    # Recompute the predicted-weight tile only when the feature tile changes
    # (batch axis is the innermost / "arbitrary" grid axis).
    @pl.when(pl.program_id(1) == 0)
    def _():
        # fe_ref rows: [bias ; feat_embᵀ ; ones]; w1_ref col 0 is zero (kills the
        # bias row), cols 1..E = w1ᵀ, col E+1 = b1 (multiplies the ones row).
        hid = jnp.tanh(
            jnp.dot(w1_ref[...], fe_ref[...], preferred_element_type=jnp.float32)
        )                                                          # (Wh, tn)
        mt_ref[...] = (
            jnp.dot(w2_ref[:, :wh], hid, preferred_element_type=jnp.float32)
            + w2_ref[:, wh:]                                       # (H, 1) = b2
        )                                                          # (H, tn)

    # out = hidden_rep @ Mt + bias   (bias is row 0 of the packed feature slab)
    acc = jnp.dot(h_ref[...], mt_ref[...], preferred_element_type=jnp.float32)
    o_ref[...] = (acc + fe_ref[0:1, :]).astype(o_ref.dtype)


def decoder_forward_pallas(hidden_rep, wpn_params, bias, *, tm=None, tn=None):
    """out = hidden_rep @ wpn() + bias, with the wpn MLP fused into the kernel."""
    B, H = hidden_rep.shape
    F = bias.shape[0]
    feat_emb = wpn_params["feat_emb"]          # (F, E)
    w1, b1 = wpn_params["w1"], wpn_params["b1"]  # (E, Wh), (Wh,)
    w2, b2 = wpn_params["w2"], wpn_params["b2"]  # (Wh, H), (H,)
    E = feat_emb.shape[1]
    Wh = w1.shape[1]
    assert feat_emb.shape == (F, E)
    assert w1.shape == (E, Wh) and b1.shape == (Wh,)
    assert w2.shape == (Wh, H) and b2.shape == (H,)

    f32 = jnp.float32
    # --- operand packing (layout plumbing only; features stay on the lane axis) ---
    # fe_pack rows: [bias ; feat_embᵀ ; ones]          -> (E+2, F)
    fe_pack = jnp.concatenate(
        [bias.astype(f32)[None, :], feat_emb.T.astype(f32), jnp.ones((1, F), f32)],
        axis=0,
    )
    # w1_pack cols: [0 ; w1ᵀ ; b1]                      -> (Wh, E+2)
    w1_pack = jnp.concatenate(
        [jnp.zeros((Wh, 1), f32), w1.T.astype(f32), b1.astype(f32)[:, None]], axis=1
    )
    # w2_pack cols: [w2ᵀ ; b2]                          -> (H, Wh+1)
    w2_pack = jnp.concatenate([w2.T.astype(f32), b2.astype(f32)[:, None]], axis=1)

    # --- tile selection ---
    if tm is None:
        tm = B if B <= 256 else next((t for t in (256, 128, 64, 32, 16, 8) if B % t == 0), B)
    if tn is None:
        if F <= 2048:
            tn = F
        else:
            tn = next((t for t in (2048, 1024, 512, 256, 128) if F % t == 0), F)
    # NOTE: shapes must divide the chosen tiles; ragged F/B would need masking.
    assert B % tm == 0 and F % tn == 0
    assert tn == F or tn % 128 == 0

    # Feature tiles outer ("parallel" -> megacore split), batch tiles inner
    # ("arbitrary") so the wpn output Mt is reused across batch tiles.
    grid = (F // tn, B // tm)

    cost = pl.CostEstimate(
        flops=2 * F * (E + 2) * Wh + 2 * F * (Wh + 1) * H + 2 * B * F * H,
        transcendentals=F * Wh,
        bytes_accessed=4 * (B * H + (E + 2) * F + Wh * (E + 2) + H * (Wh + 1) + B * F),
    )

    return pl.pallas_call(
        _decoder_fused_kernel,
        out_shape=jax.ShapeDtypeStruct((B, F), hidden_rep.dtype),
        grid_spec=pltpu.PrefetchScalarGridSpec(
            num_scalar_prefetch=0,
            grid=grid,
            in_specs=[
                pl.BlockSpec((tm, H), lambda j, i: (i, 0)),       # hidden_rep
                pl.BlockSpec((E + 2, tn), lambda j, i: (0, j)),   # packed per-feature slab
                pl.BlockSpec((Wh, E + 2), lambda j, i: (0, 0)),   # wpn layer-1 (+b1)
                pl.BlockSpec((H, Wh + 1), lambda j, i: (0, 0)),   # wpn layer-2 (+b2)
            ],
            out_specs=pl.BlockSpec((tm, tn), lambda j, i: (i, j)),
            scratch_shapes=[pltpu.VMEM((H, tn), jnp.float32)],     # Mt, reused over batch
        ),
        compiler_params=pltpu.CompilerParams(
            dimension_semantics=("parallel", "arbitrary")
        ),
        cost_estimate=cost,
    )(hidden_rep, fe_pack, w1_pack, w2_pack)


@jax.jit
def decoder_forward(hidden_rep, wpn_params, bias):
    return decoder_forward_pallas(hidden_rep, wpn_params, bias)


# ---------------------------------------------------------------------------
# Weight Predictor Network (wpn) parameters -- deterministic synthetic setup.
# ---------------------------------------------------------------------------
def make_wpn_params(key, num_features, emb_dim, wpn_hidden, hidden_dim):
    k1, k2, k3 = jax.random.split(key, 3)
    return {
        "feat_emb": jax.random.normal(k1, (num_features, emb_dim), jnp.float32) * 0.1,
        "w1": jax.random.normal(k2, (emb_dim, wpn_hidden), jnp.float32) * 0.1,
        "b1": jnp.zeros((wpn_hidden,), jnp.float32),
        "w2": jax.random.normal(k3, (wpn_hidden, hidden_dim), jnp.float32) * 0.1,
        "b2": jnp.zeros((hidden_dim,), jnp.float32),
    }


def wpn_reference(params):
    """Plain-JAX wpn(): returns M with shape (hidden_dim, num_features)."""
    hp = lax.Precision.HIGHEST
    h = jnp.tanh(jnp.dot(params["feat_emb"], params["w1"], precision=hp) + params["b1"])
    v = jnp.dot(h, params["w2"], precision=hp) + params["b2"]  # (num_features, H)
    return v.T                                                  # (H, num_features)


if __name__ == "__main__":
    # Small shapes consistent with the module.
    batch = 8
    hidden_dim = 32
    num_features = 256
    emb_dim = 16
    wpn_hidden = 32

    key = jax.random.PRNGKey(0)
    k_h, k_wpn, k_b = jax.random.split(key, 3)

    hidden_rep = jax.random.normal(k_h, (batch, hidden_dim), jnp.float32)
    wpn_params = make_wpn_params(k_wpn, num_features, emb_dim, wpn_hidden, hidden_dim)

    M = wpn_reference(wpn_params)                               # (H, F)

    # Case 1: module init -- nn.Parameter(torch.zeros(num_features)).
    bias0 = jnp.zeros((num_features,), jnp.float32)
    out0 = jax.block_until_ready(decoder_forward(hidden_rep, wpn_params, bias0))
    ref0 = jnp.dot(hidden_rep, M, precision=lax.Precision.HIGHEST) + bias0
    assert out0.shape == (batch, num_features)
    assert jnp.allclose(out0, ref0, atol=1e-4, rtol=1e-4)

    # Case 2: non-zero (trained) bias to exercise the folded-bias path.
    bias1 = jax.random.normal(k_b, (num_features,), jnp.float32) * 0.1
    out1 = jax.block_until_ready(decoder_forward(hidden_rep, wpn_params, bias1))
    ref1 = jnp.dot(hidden_rep, M, precision=lax.Precision.HIGHEST) + bias1
    assert jnp.allclose(out1, ref1, atol=1e-4, rtol=1e-4)

    print("KERNEL_OK")
</pallas_src>

<mosaic_0001>
module attributes {stable_mosaic.version = 11 : i64} {
  func.func @_decoder_fused_kernel(%arg0: i32, %arg1: i32, %arg2: memref<8x32xf32, #tpu.memory_space<vmem>>, %arg3: memref<18x256xf32, #tpu.memory_space<vmem>>, %arg4: memref<32x18xf32, #tpu.memory_space<vmem>>, %arg5: memref<32x33xf32, #tpu.memory_space<vmem>>, %arg6: memref<8x256xf32, #tpu.memory_space<vmem>>, %arg7: memref<32x256xf32, #tpu.memory_space<vmem>>) attributes {dimension_semantics = [#tpu.dimension_semantics<parallel>, #tpu.dimension_semantics<arbitrary>], iteration_bounds = array<i64: 1, 1>, scalar_prefetch = 0 : i64, scratch_operands = 1 : i64, tpu.core_type = #tpu.core_type<tc>, window_params = [{transform_indices = @transform_0, window_bounds = array<i64: 8, 32>}, {transform_indices = @transform_1, window_bounds = array<i64: 18, 256>}, {pipeline_mode = #tpu.pipeline_mode<synchronous>, transform_indices = @transform_2, window_bounds = array<i64: 32, 18>}, {pipeline_mode = #tpu.pipeline_mode<synchronous>, transform_indices = @transform_3, window_bounds = array<i64: 32, 33>}, {transform_indices = @transform_4, window_bounds = array<i64: 8, 256>}]} {
    %c0_i32 = arith.constant 0 : i32
    %0 = arith.cmpi eq, %arg1, %c0_i32 : i32
    %1 = arith.extui %0 : i1 to i32
    %c0_i32_0 = arith.constant 0 : i32
    %2 = arith.cmpi ne, %1, %c0_i32_0 : i32
    scf.if %2 {
      %c0_8 = arith.constant 0 : index
      %c0_9 = arith.constant 0 : index
      %10 = vector.load %arg4[%c0_8, %c0_9] : memref<32x18xf32, #tpu.memory_space<vmem>>, vector<32x18xf32>
      %c0_10 = arith.constant 0 : index
      %c0_11 = arith.constant 0 : index
      %11 = vector.load %arg3[%c0_10, %c0_11] : memref<18x256xf32, #tpu.memory_space<vmem>>, vector<18x256xf32>
      %cst_12 = arith.constant dense<0.000000e+00> : vector<32x256xf32>
      %12 = tpu.matmul %10, %11, %cst_12 {dimension_numbers = #tpu.dot_dimension_numbers<[1], [0], [0], [1], [0, 0, 1, 1], [], []>} : vector<32x18xf32>, vector<18x256xf32>, vector<32x256xf32> -> vector<32x256xf32>
      %13 = math.tanh %12 : vector<32x256xf32>
      %c0_13 = arith.constant 0 : index
      %c0_14 = arith.constant 0 : index
      %14 = vector.load %arg5[%c0_13, %c0_14] : memref<32x33xf32, #tpu.memory_space<vmem>>, vector<32x32xf32>
      %cst_15 = arith.constant dense<0.000000e+00> : vector<32x256xf32>
      %15 = tpu.matmul %14, %13, %cst_15 {dimension_numbers = #tpu.dot_dimension_numbers<[1], [0], [0], [1], [0, 0, 1, 1], [], []>} : vector<32x32xf32>, vector<32x256xf32>, vector<32x256xf32> -> vector<32x256xf32>
      %c0_16 = arith.constant 0 : index
      %c32 = arith.constant 32 : index
      %16 = vector.load %arg5[%c0_16, %c32] : memref<32x33xf32, #tpu.memory_space<vmem>>, vector<32x1xf32>
      %17 = vector.broadcast %16 : vector<32x1xf32> to vector<32x256xf32>
      %18 = arith.addf %15, %17 : vector<32x256xf32>
      %c0_17 = arith.constant 0 : index
      %c0_18 = arith.constant 0 : index
      %19 = vector.load %arg7[%c0_17, %c0_18] : memref<32x256xf32, #tpu.memory_space<vmem>>, vector<32x256xf32>
      tpu.vector_store %arg7[%c0_17, %c0_18], %18 {strides = array<i32>} : memref<32x256xf32, #tpu.memory_space<vmem>>, vector<32x256xf32>,
    } else {
    }
    %c0 = arith.constant 0 : index
    %c0_1 = arith.constant 0 : index
    %3 = vector.load %arg2[%c0, %c0_1] : memref<8x32xf32, #tpu.memory_space<vmem>>, vector<8x32xf32>
    %c0_2 = arith.constant 0 : index
    %c0_3 = arith.constant 0 : index
    %4 = vector.load %arg7[%c0_2, %c0_3] : memref<32x256xf32, #tpu.memory_space<vmem>>, vector<32x256xf32>
    %cst = arith.constant dense<0.000000e+00> : vector<8x256xf32>
    %5 = tpu.matmul %3, %4, %cst {dimension_numbers = #tpu.dot_dimension_numbers<[1], [0], [0], [1], [0, 0, 1, 1], [], []>} : vector<8x32xf32>, vector<32x256xf32>, vector<8x256xf32> -> vector<8x256xf32>
    %c0_4 = arith.constant 0 : index
    %c0_5 = arith.constant 0 : index
    %6 = vector.load %arg3[%c0_4, %c0_5] : memref<18x256xf32, #tpu.memory_space<vmem>>, vector<1x256xf32>
    %7 = vector.broadcast %6 : vector<1x256xf32> to vector<8x256xf32>
    %8 = arith.addf %5, %7 : vector<8x256xf32>
    %c0_6 = arith.constant 0 : index
    %c0_7 = arith.constant 0 : index
    %9 = vector.load %arg6[%c0_6, %c0_7] : memref<8x256xf32, #tpu.memory_space<vmem>>, vector<8x256xf32>
    tpu.vector_store %arg6[%c0_6, %c0_7], %8 {strides = array<i32>} : memref<8x256xf32, #tpu.memory_space<vmem>>, vector<8x256xf32>,
    return
  }
  func.func @transform_0(%arg0: i32, %arg1: i32) -> (i32, i32) {
    %c0_i32 = arith.constant 0 : i32
    %c0_i32_0 = arith.constant 0 : i32
    return %arg1, %c0_i32 : i32, i32
  }
  func.func @transform_1(%arg0: i32, %arg1: i32) -> (i32, i32) {
    %c0_i32 = arith.constant 0 : i32
    %c0_i32_0 = arith.constant 0 : i32
    return %c0_i32, %arg0 : i32, i32
  }
  func.func @transform_2(%arg0: i32, %arg1: i32) -> (i32, i32) {
    %c0_i32 = arith.constant 0 : i32
    %c0_i32_0 = arith.constant 0 : i32
    %c0_i32_1 = arith.constant 0 : i32
    return %c0_i32, %c0_i32_0 : i32, i32
  }
  func.func @transform_3(%arg0: i32, %arg1: i32) -> (i32, i32) {
    %c0_i32 = arith.constant 0 : i32
    %c0_i32_0 = arith.constant 0 : i32
    %c0_i32_1 = arith.constant 0 : i32
    return %c0_i32, %c0_i32_0 : i32, i32
  }
  func.func @transform_4(%arg0: i32, %arg1: i32) -> (i32, i32) {
    %c0_i32 = arith.constant 0 : i32
    return %arg1, %arg0 : i32, i32
  }
}

</mosaic_0001>

<bundles_post_ra>
// kernel: decoder_forward.1
= control target key start
LH: loop header
LB: loop body
LE: loop exit
PB: predicated region body
PF: predicated region fallthrough
CT: control target
= control target key end

     0   :  { %vm45_vm0 = vcmask 1041408   ;;  %vm32_vm1 = vcmask 146432   ;;  %s448_s0 = inlined_call_operand.vmem [shape: f32[8,32], index: 0, kind: input, shape index: {}]   ;;  %s449_s1 = inlined_call_operand.vmem [shape: f32[18,256], index: 1, kind: input, shape index: {}]   ;;  %s450_s2 = inlined_call_operand.vmem [shape: f32[32,18], index: 2, kind: input, shape index: {}]   ;;  %s451_s3 = inlined_call_operand.vmem [shape: f32[32,33], index: 3, kind: input, shape index: {}]   ;;  %s452_s4 = inlined_call_operand.hbm [shape: f32[8,256], index: 4, kind: output, shape index: {}]  }
   0x1   :  { %v30_v0 = vld [vmem:[%s449_s1 + $0x20] sm:$0x3]  ;;  %v31_v1 = vld [vmem:[%s449_s1 + $0x28] sm:$0x3]  ;;  %v28_v2 = vld [vmem:[%s449_s1 + $0x10] sm:$0xff] }
   0x2   :  { %294 = vmatpush.msk.msra.mxu0 %vm45_vm0, %v30_v0  ;;  %299 = vmatpush.msk.msra.mxu1 %vm45_vm0, %v31_v1  ;;  %v29_v3 = vld [vmem:[%s449_s1 + $0x18] sm:$0xff]  ;;  %v26_v4 = vld [vmem:[%s449_s1] sm:$0xff]  ;;  %v27_v5 = vld [vmem:[%s449_s1 + $0x8] sm:$0xff] }
   0x3   :  { %v22_v6 = vld [vmem:[%s450_s2] sm:$0xff] }
   0x4   :  { %66 = vmatpush.msra.mxu0 %v28_v2  ;;  %95 = vmatpush.msra.mxu1 %v29_v3 }
   0x5   :  { %9 = vsyncpa [#allocation4], 0  ;;  %v23_v7 = vld [vmem:[%s450_s2 + $0x8] sm:$0xff]  ;;  %v24_v8 = vld [vmem:[%s450_s2 + $0x10] sm:$0xff]  ;;  %v360_v15 = vmov 32   ;;  %vm142_vm2 = vcmask 261120  }
   0x6   :  { %67 = vmatpush.msra.mxu0 %v26_v4  ;;  %96 = vmatpush.msra.mxu1 %v27_v5  ;;  %v25_v9 = vld [vmem:[%s450_s2 + $0x18] sm:$0xff]  ;;  %v119_v14 = vld [vmem:[%s451_s3 + $0x8] sm:$0xff]  ;;  %v118_v18 = vld [vmem:[%s451_s3] sm:$0xff]  ;;  %s361_s19 = smov [#allocation3]  }
   0x7   :  { %295 = vmatmul.msk.f32.vlgmr.msra.gmra.mxu0 %vm32_vm1, %v22_v6  ;;  %300 = vmatmul.msk.f32.vlgmr.msra.gmra.mxu1 %vm32_vm1, %v22_v6  ;;  %v121_v21 = vld [vmem:[%s451_s3 + $0x18] sm:$0xff]  ;;  %v120_v24 = vld [vmem:[%s451_s3 + $0x10] sm:$0xff]  ;;  %v217_v50 = vld [vmem:[%s448_s0] sm:$0xff]  ;;  %s283_s20 = sshll.u32 %s361_s19, 4  ;;  %s285_s0 = sshll.u32 %s452_s4, 4  ;;  %s284_s20 = int_to_ptr.vmem [resolvable:$true] %s283_s20  ;;  %s286_s0 = int_to_ptr.hbm [resolvable:$true] %s285_s0 }
   0x8   :  { %317 = vset.pattern.permute.xlu1 %v360_v15  ;;  %316 = vset.pattern.permute.xlu0 %v360_v15  ;;  %v226_v52 = vld [vmem:[%s449_s1] ss:$8 sm:$0x3] }
   0x9   :  { %129 = vperm.xlu1 %317, %v119_v14   ;;  %139 = vperm.xlu0 %316, %v121_v21   ;;  %v228_v53 = vperm.slane %v226_v52, 0  ;;  %v229_v54 = vperm.slane %v226_v52, 1 }
   0xf   :  { %296 = vmatmul.msk.f32.gmra.mxu0 %vm32_vm1, %v23_v7  ;;  %301 = vmatmul.msk.f32.gmra.mxu1 %vm32_vm1, %v23_v7 }
  0x11   :  { %124 = vperm.xlu1 %317, %v118_v18   ;;  %134 = vperm.xlu0 %316, %v120_v24  }
  0x17   :  { %297 = vmatmul.msk.f32.gmra.mxu0 %vm32_vm1, %v24_v8  ;;  %302 = vmatmul.msk.f32.gmra.mxu1 %vm32_vm1, %v24_v8 }
  0x1f   :  { %298 = vmatmul.msk.f32.gmra.mxu0 %vm32_vm1, %v25_v9  ;;  %303 = vmatmul.msk.f32.gmra.mxu1 %vm32_vm1, %v25_v9 }
  0x7b   :  { %v140_v35 = vpop.permute.xlu0 %139  ;;  %v130_v38 = vpop.permute.xlu1 %129 }
  0x83   :  { %v135_v39 = vpop.permute.xlu0 %134  ;;  %v125_v45 = vpop.permute.xlu1 %124 }
  0x84   :  { %v69_v10 = vpop.f32.mrf.mxu0  ;;  %v98_v11 = vpop.f32.mrf.mxu1 }
  0x8c   :  { %v72_v12 = vpop.f32.mrf.mxu0  ;;  %v101_v13 = vpop.f32.mrf.mxu1 }
  0x94   :  { %v75_v16 = vpop.f32.mrf.mxu0  ;;  %v104_v17 = vpop.f32.mrf.mxu1 }
  0x9c   :  { %v78_v19 = vpop.f32.mrf.mxu0  ;;  %v107_v20 = vpop.f32.mrf.mxu1 }
  0x9d   :  { %318 = vtanh.f32 %v78_v19 }
  0x9e   :  { %320 = vtanh.f32 %v107_v20 }
  0x9f   :  { %322 = vtanh.f32 %v75_v16 }
  0xa0   :  { %324 = vtanh.f32 %v104_v17 }
  0xa1   :  { %326 = vtanh.f32 %v72_v12 }
  0xa2   :  { %328 = vtanh.f32 %v101_v13 }
  0xa3   :  { %v319_v22 = vpop.eup %318  ;;  %330 = vtanh.f32 %v69_v10 }
  0xa4   :  { %v321_v23 = vpop.eup %320  ;;  %332 = vtanh.f32 %v98_v11  ;;  %163 = vmatpush.msra.mxu2 %v319_v22 }
  0xa5   :  { %v323_v25 = vpop.eup %322  ;;  %192 = vmatpush.msra.mxu3 %v321_v23 }
  0xa6   :  { %v325_v26 = vpop.eup %324  ;;  %164 = vmatpush.msra.mxu2 %v323_v25 }
  0xa7   :  { %v327_v27 = vpop.eup %326  ;;  %193 = vmatpush.msra.mxu3 %v325_v26 }
  0xa8   :  { %v329_v28 = vpop.eup %328  ;;  %165 = vmatpush.msra.mxu2 %v327_v27 }
  0xa9   :  { %v331_v29 = vpop.eup %330  ;;  %194 = vmatpush.msra.mxu3 %v329_v28 }
  0xaa   :  { %v333_v30 = vpop.eup %332  ;;  %166 = vmatpush.msra.mxu2 %v331_v29 }
  0xab   :  { %195 = vmatpush.msra.mxu3 %v333_v30  ;;  %304 = vmatmul.msk.f32.vlgmr.msra.gmra.mxu2 %vm142_vm2, %v118_v18 }
  0xac   :  { %308 = vmatmul.msk.f32.vlgmr.msra.gmra.mxu3 %vm142_vm2, %v118_v18 }
  0xb3   :  { %305 = vmatmul.msk.f32.gmra.mxu2 %vm142_vm2, %v119_v14 }
  0xb4   :  { %309 = vmatmul.msk.f32.gmra.mxu3 %vm142_vm2, %v119_v14 }
  0xbb   :  { %306 = vmatmul.msk.f32.gmra.mxu2 %vm142_vm2, %v120_v24 }
  0xbc   :  { %310 = vmatmul.msk.f32.gmra.mxu3 %vm142_vm2, %v120_v24 }
  0xc3   :  { %307 = vmatmul.msk.f32.gmra.mxu2 %vm142_vm2, %v121_v21 }
  0xc4   :  { %311 = vmatmul.msk.f32.gmra.mxu3 %vm142_vm2, %v121_v21 }
 0x12e   :  { %v168_v31 = vpop.f32.mrf.mxu2 }
 0x12f   :  { %v197_v32 = vpop.f32.mrf.mxu3  ;;  %v169_v49 = vadd.f32 %v168_v31, %v125_v45 }
 0x130   :  { %v198_v51 = vadd.f32 %v197_v32, %v125_v45 }
 0x136   :  { %v171_v33 = vpop.f32.mrf.mxu2 }
 0x137   :  { %v200_v34 = vpop.f32.mrf.mxu3  ;;  %v172_v47 = vadd.f32 %v171_v33, %v130_v38 }
 0x138   :  { %v201_v48 = vadd.f32 %v200_v34, %v130_v38 }
 0x13e   :  { %v174_v36 = vpop.f32.mrf.mxu2 }
 0x13f   :  { %v203_v37 = vpop.f32.mrf.mxu3  ;;  %v175_v44 = vadd.f32 %v174_v36, %v135_v39 }
 0x140   :  { %v204_v46 = vadd.f32 %v203_v37, %v135_v39 }
 0x146   :  { %v177_v40 = vpop.f32.mrf.mxu2 }
 0x147   :  { %v178_v41 = vadd.f32 %v177_v40, %v140_v35  ;;  %v206_v42 = vpop.f32.mrf.mxu3 }
 0x148   :  { %v207_v43 = vadd.f32 %v206_v42, %v140_v35 }
 0x149   :  { %248 = vmatpush.msrb.mxu0 %v178_v41 }
 0x14a   :  { %268 = vmatpush.msrb.mxu1 %v207_v43 }
 0x14b   :  { %249 = vmatpush.msrb.mxu0 %v175_v44 }
 0x14c   :  { %269 = vmatpush.msrb.mxu1 %v204_v46 }
 0x14d   :  { %250 = vmatpush.msrb.mxu0 %v172_v47 }
 0x14e   :  { %270 = vmatpush.msrb.mxu1 %v201_v48 }
 0x14f   :  { %251 = vmatpush.msrb.mxu0 %v169_v49 }
 0x150   :  { %271 = vmatpush.msrb.mxu1 %v198_v51  ;;  %312 = vmatmul.msk.f32.vlgmr.msrb.gmra.mxu0 %vm142_vm2, %v217_v50 }
 0x151   :  { %313 = vmatmul.msk.f32.vlgmr.msrb.gmra.mxu1 %vm142_vm2, %v217_v50 }
 0x1cd   :  { %v253_v55 = vpop.f32.mrf.mxu0 }
 0x1ce   :  { %v254_v56 = vadd.f32 %v253_v55, %v228_v53  ;;  %v273_v57 = vpop.f32.mrf.mxu1 }
 0x1cf   :  { %v274_v58 = vadd.f32 %v273_v57, %v229_v54 }
 0x1d0   :  { %276 = vst [vmem:[#allocation3] sm:$0xff] %v254_v56 }
 0x1d1   :  { %277 = vst [vmem:[#allocation3 + $0x8] sm:$0xff] %v274_v58 }
 0x1d2   :  { %288 = dma.vmem_to_hbm [thread:$0]  %s284_s20, 256, %s286_s0, [#allocation4]  }
 0x1d3   :  { %358 = dma.done.wait [#allocation4], 256  }
 0x1d4   :  { %359 = vsyncadd [#allocation4], 4294967040 }
 0x1d5   :  { %293 = vsyncpa [#allocation4], 1 }

</bundles_post_ra>
